<compile_context>
chip_gen: v5e
topology: v5e:2x2
jax: 0.10.0
libtpu: 0.0.40
codegen_flags: <defaults>
</compile_context>

<pallas_src>
import functools

import jax
import jax.numpy as jnp
from jax.experimental import pallas as pl
from jax.experimental.pallas import tpu as pltpu


# ----------------------------------------------------------------------------
# Single fused kernel
# ----------------------------------------------------------------------------
def _fused_mlp_fusion_kernel(
    x_ref, y_ref,
    w1s_ref, w2s_ref, w3s_ref,          # sub MLP weights (w3s is augmented: (H0, C+Fmm))
    w1m_ref, w2m_ref, w3m_ref,          # mm MLP weights
    wa_ref,                             # attention gate weight (2C, 2C)
    w1f_ref, w2f_ref, w3f_ref,          # fusion MLP weights
    bias_ref,                           # packed f32 biases (10, max_width)
    out_ref,                            # lane-dense output slab (TB, out_w)
    *, wb_sel, C, Fmm, out_w, bias_widths, compute_dtype):
    f32 = jnp.float32
    cd = compute_dtype

    bpack = bias_ref[...]               # one packed-bias load

    def bias(i):
        return bpack[i:i + 1, 0:bias_widths[i]]               # (1, width) static slice

    def dot(a, w_ref):                   # bf16 MXU operands, f32 accumulation
        return jnp.dot(a.astype(cd), w_ref[...], preferred_element_type=f32)

    def mlp3(h, w1_ref, b1, w2_ref, b2, w3_ref, b3):
        h = jnp.maximum(dot(h, w1_ref) + b1, 0.0)
        h = jnp.maximum(dot(h, w2_ref) + b2, 0.0)
        return dot(h, w3_ref) + b3

    x = x_ref[...].astype(f32)
    y = y_ref[...].astype(f32)

    # ---- sub MLP; augmented decoder emits [out_sub | p2] in one MXU push --------
    h = jnp.maximum(dot(x, w1s_ref) + bias(0), 0.0)
    h = jnp.maximum(dot(h, w2s_ref) + bias(1), 0.0)
    sub3 = dot(h, w3s_ref) + bias(2)                            # (TB, C + Fmm)
    out_sub = sub3[:, 0:C]                                      # (TB, C)
    p2 = sub3[:, C:C + Fmm]              # (TB, Fmm): group score duplicated per feature

    TB = out_sub.shape[0]

    # ---- top-k feature mask directly at feature granularity (pure VPU + reduce) --
    # feat_mask[b, f] = 1 iff group f//2 ranks in the top wb_sel groups for row b.
    # Each group appears twice in p2, so "rank < wb_sel" <=> "count < 2*wb_sel"
    # where count = #{f': p2[f'] > p2[f]} + #{f': p2[f'] == p2[f] and f' < f}.
    col = jax.lax.broadcasted_iota(jnp.int32, (TB, Fmm), 1)
    cnt = jnp.zeros((TB, Fmm), f32)
    for j in range(Fmm):                                        # Fmm small & static
        pj = p2[:, j:j + 1]
        greater = (p2 > pj).astype(f32)
        tie_before = jnp.logical_and(p2 == pj, col < j).astype(f32)
        cj = jnp.sum(greater + tie_before, axis=1, keepdims=True)
        cnt = cnt + cj * (col == j).astype(f32)
    feat_mask = (cnt < float(2 * wb_sel)).astype(f32)
    input_mm = y * feat_mask

    # ---- mm MLP ------------------------------------------------------------------
    out_mm = mlp3(input_mm, w1m_ref, bias(3), w2m_ref, bias(4), w3m_ref, bias(5))

    # ---- concat in registers, attention gate, fusion MLP --------------------------
    z = jnp.concatenate([out_sub, out_mm], axis=1)              # (TB, 2C), stays in vregs
    att = jax.nn.sigmoid(dot(z, wa_ref) + bias(6))
    g = z * att
    out_fused = mlp3(g, w1f_ref, bias(7), w2f_ref, bias(8), w3f_ref, bias(9))

    # ---- one lane-dense store: [out_sub | out_mm | out | zero pad] ----------------
    parts = [out_sub, out_mm, out_fused]
    pad = out_w - 3 * C
    if pad > 0:
        parts.append(jnp.zeros((TB, pad), f32))
    out_ref[...] = jnp.concatenate(parts, axis=1).astype(out_ref.dtype)


# ----------------------------------------------------------------------------
# Parameter construction (deterministic, torch nn.Linear-like uniform init)
# ----------------------------------------------------------------------------
def _init_linear(key, fan_in, fan_out):
    kw, kb = jax.random.split(key)
    bound = 1.0 / (fan_in ** 0.5)
    w = jax.random.uniform(kw, (fan_in, fan_out), jnp.float32, -bound, bound)
    b = jax.random.uniform(kb, (1, fan_out), jnp.float32, -bound, bound)
    return w, b


def _init_mlp(key, features, hidden, class_num):
    k1, k2, k3 = jax.random.split(key, 3)
    w1, b1 = _init_linear(k1, features, hidden)
    w2, b2 = _init_linear(k2, hidden, hidden)
    w3, b3 = _init_linear(k3, hidden, class_num)
    return (w1, b1, w2, b2, w3, b3)


def init_mlp_fusion_params(key, features, features_mm, hidden_size, class_num):
    ks, km, ka, kf = jax.random.split(key, 4)
    return {
        "sub": _init_mlp(ks, features, hidden_size[0], class_num),
        "mm": _init_mlp(km, features_mm, hidden_size[1], class_num),
        "att": _init_linear(ka, class_num * 2, class_num * 2),
        "fusion": _init_mlp(kf, class_num * 2, hidden_size[2], class_num),
    }


def pack_mlp_fusion_params(params, *, wb_num, compute_dtype=jnp.bfloat16):
    """One-time packing (outside the hot path):
       * fold the group-sum matrix into the sub-MLP decoder weight/bias,
       * cast all weights to the MXU compute dtype (bf16 by default),
       * pack all 10 biases into one f32 (10, max_width) slab (one DMA)."""
    w1s, b1s, w2s, b2s, w3s, b3s = params["sub"]
    w1m, b1m, w2m, b2m, w3m, b3m = params["mm"]
    wa, ba = params["att"]
    w1f, b1f, w2f, b2f, w3f, b3f = params["fusion"]

    C = int(w3s.shape[1])
    assert C % wb_num == 0
    G = C // wb_num
    Fmm = 2 * G
    # gmat2[c, f] = 1 iff class c belongs to group f//2  (group score duplicated per feature)
    c_idx = jnp.arange(C)[:, None]
    f_idx = jnp.arange(Fmm)[None, :]
    gmat2 = (c_idx // wb_num == f_idx // 2).astype(jnp.float32)          # (C, Fmm)
    w3s_aug = jnp.concatenate([w3s, w3s @ gmat2], axis=1)                # (H0, C+Fmm)
    b3s_aug = jnp.concatenate([b3s, b3s @ gmat2], axis=1)                # (1, C+Fmm)

    weights = (w1s, w2s, w3s_aug, w1m, w2m, w3m, wa, w1f, w2f, w3f)
    biases = (b1s, b2s, b3s_aug, b1m, b2m, b3m, ba, b1f, b2f, b3f)
    weights = tuple(w.astype(compute_dtype) for w in weights)
    biases = tuple(b.astype(jnp.float32) for b in biases)

    maxw = max(int(b.shape[1]) for b in biases)
    bias_pack = jnp.zeros((len(biases), maxw), jnp.float32)
    for i, b in enumerate(biases):
        bias_pack = bias_pack.at[i, : b.shape[1]].set(b[0])

    return {"weights": weights, "biases": biases, "bias_pack": bias_pack,
            "compute_dtype": compute_dtype, "class_num": C, "features_mm": Fmm,
            "wb_num": wb_num}


# ----------------------------------------------------------------------------
# Full fused forward (do_bn=False, dropout=0)
# ----------------------------------------------------------------------------
def mlp_fusion_forward(x, y, packed, *, wb_sel, batch_tile=512, num_batch_splits=1):
    """num_batch_splits: set >=2 on v7x (2 TensorCores) for large B so the
    'parallel' batch grid axis actually shards across cores; no effect on v5e/v6e."""
    x = x.astype(jnp.float32)
    y = y.astype(jnp.float32)
    weights = packed["weights"]
    bias_pack = packed["bias_pack"]
    cd = packed["compute_dtype"]
    C = packed["class_num"]
    Fmm = packed["features_mm"]

    B, Fx = x.shape
    assert y.shape == (B, Fmm), "features_mm mismatch"

    bias_widths = tuple(int(w.shape[1]) for w in weights)     # out-dim of each layer
    out_w = ((3 * C + 127) // 128) * 128                      # lane-dense padded slab width

    if num_batch_splits > 1 and B >= 16 * num_batch_splits:
        TB = min(batch_tile, ((-(-B // num_batch_splits)) + 7) // 8 * 8)
    else:
        TB = B if B <= batch_tile else batch_tile
    nb = pl.cdiv(B, TB)
    # Note: if B % TB != 0 the tail block reads padded rows; rows are independent and
    # Pallas masks OOB output writes, so results stay correct.

    kernel = functools.partial(_fused_mlp_fusion_kernel,
                               wb_sel=wb_sel, C=C, Fmm=Fmm, out_w=out_w,
                               bias_widths=bias_widths, compute_dtype=cd)

    batch_map = lambda i: (i, 0)
    const_map = lambda i: (0, 0)

    in_specs = (
        [pl.BlockSpec((TB, Fx), batch_map),
         pl.BlockSpec((TB, Fmm), batch_map)]
        + [pl.BlockSpec(w.shape, const_map) for w in weights]
        + [pl.BlockSpec(bias_pack.shape, const_map)]
    )
    out_specs = pl.BlockSpec((TB, out_w), batch_map)
    out_shape = jax.ShapeDtypeStruct((B, out_w), jnp.float32)

    slab = pl.pallas_call(
        kernel,
        out_shape=out_shape,
        grid=(nb,),
        in_specs=in_specs,
        out_specs=out_specs,
        compiler_params=pltpu.CompilerParams(
            dimension_semantics=("parallel",),
            vmem_limit_bytes=32 * 1024 * 1024),
    )(x, y, *weights, bias_pack)

    return slab[:, 0:C], slab[:, C:2 * C], slab[:, 2 * C:3 * C]


# ----------------------------------------------------------------------------
# Pure-JAX reference mirroring the kernel numerics (bf16 MXU operands, f32 accum)
# so the comparison is stable; semantics follow the PyTorch forward.
# ----------------------------------------------------------------------------
def _ref_forward(x, y, packed, *, wb_sel):
    f32 = jnp.float32
    cd = packed["compute_dtype"]
    (w1s, w2s, w3s_aug, w1m, w2m, w3m, wa, w1f, w2f, w3f) = packed["weights"]
    (b1s, b2s, b3s_aug, b1m, b2m, b3m, ba, b1f, b2f, b3f) = packed["biases"]
    C = packed["class_num"]

    def dot(a, w):
        return jnp.dot(a.astype(cd), w, preferred_element_type=f32)

    def mlp3(h, w1, b1, w2, b2, w3, b3):
        h = jnp.maximum(dot(h, w1) + b1, 0.0)
        h = jnp.maximum(dot(h, w2) + b2, 0.0)
        return dot(h, w3) + b3

    x = x.astype(f32)
    y = y.astype(f32)
    sub3 = mlp3(x, w1s, b1s, w2s, b2s, w3s_aug, b3s_aug)
    out_sub = sub3[:, :C]
    p_mm = sub3[:, C::2]                       # even duplicate columns = group sums
    idx = jax.lax.top_k(p_mm, wb_sel)[1]
    B = x.shape[0]
    keep = jnp.zeros_like(p_mm).at[jnp.arange(B)[:, None], idx].set(1.0)
    feat_mask = jnp.repeat(keep, 2, axis=1)
    input_mm = y * feat_mask
    out_mm = mlp3(input_mm, w1m, b1m, w2m, b2m, w3m, b3m)
    z = jnp.concatenate([out_sub, out_mm], axis=1)
    z = z * jax.nn.sigmoid(dot(z, wa) + ba)
    out = mlp3(z, w1f, b1f, w2f, b2f, w3f, b3f)
    return out_sub, out_mm, out


if __name__ == "__main__":
    # Small shapes consistent with the module:
    #   features=32, features_mm=8, class_num=8 -> wb_num = 8/8*2 = 2, groups = 4
    B, features, features_mm, class_num = 8, 32, 8, 8
    hidden_size = [32, 32, 32]
    wb_sel = 2
    wb_num = int(class_num / features_mm * 2)

    key = jax.random.PRNGKey(0)
    kx, ky, kp = jax.random.split(key, 3)
    x = jax.random.normal(kx, (B, features), jnp.float32)
    y = jax.random.normal(ky, (B, features_mm), jnp.float32)
    params = init_mlp_fusion_params(kp, features, features_mm, hidden_size, class_num)
    packed = pack_mlp_fusion_params(params, wb_num=wb_num)   # one-time, outside hot path

    out_sub, out_mm, output = mlp_fusion_forward(x, y, packed, wb_sel=wb_sel)
    jax.block_until_ready((out_sub, out_mm, output))

    r_sub, r_mm, r_out = _ref_forward(x, y, packed, wb_sel=wb_sel)
    # bf16 MXU operands -> tolerances loosened vs the pure-f32 check.
    assert jnp.allclose(out_sub, r_sub, atol=1e-2, rtol=1e-2)
    assert jnp.allclose(out_mm, r_mm, atol=1e-2, rtol=1e-2)
    assert jnp.allclose(output, r_out, atol=1e-2, rtol=1e-2)

    print("KERNEL_OK")
</pallas_src>

<mosaic_0001>
module attributes {stable_mosaic.version = 11 : i64} {
  func.func @_fused_mlp_fusion_kernel(%arg0: i32, %arg1: memref<8x32xf32, #tpu.memory_space<vmem>>, %arg2: memref<8x8xf32, #tpu.memory_space<vmem>>, %arg3: memref<32x32xbf16, #tpu.memory_space<vmem>>, %arg4: memref<32x32xbf16, #tpu.memory_space<vmem>>, %arg5: memref<32x16xbf16, #tpu.memory_space<vmem>>, %arg6: memref<8x32xbf16, #tpu.memory_space<vmem>>, %arg7: memref<32x32xbf16, #tpu.memory_space<vmem>>, %arg8: memref<32x8xbf16, #tpu.memory_space<vmem>>, %arg9: memref<16x16xbf16, #tpu.memory_space<vmem>>, %arg10: memref<16x32xbf16, #tpu.memory_space<vmem>>, %arg11: memref<32x32xbf16, #tpu.memory_space<vmem>>, %arg12: memref<32x8xbf16, #tpu.memory_space<vmem>>, %arg13: memref<10x32xf32, #tpu.memory_space<vmem>>, %arg14: memref<8x128xf32, #tpu.memory_space<vmem>>) attributes {dimension_semantics = [#tpu.dimension_semantics<parallel>], iteration_bounds = array<i64: 1>, scalar_prefetch = 0 : i64, scratch_operands = 0 : i64, tpu.core_type = #tpu.core_type<tc>, window_params = [{transform_indices = @transform_0, window_bounds = array<i64: 8, 32>}, {transform_indices = @transform_1, window_bounds = array<i64: 8, 8>}, {pipeline_mode = #tpu.pipeline_mode<synchronous>, transform_indices = @transform_2, window_bounds = array<i64: 32, 32>}, {pipeline_mode = #tpu.pipeline_mode<synchronous>, transform_indices = @transform_3, window_bounds = array<i64: 32, 32>}, {pipeline_mode = #tpu.pipeline_mode<synchronous>, transform_indices = @transform_4, window_bounds = array<i64: 32, 16>}, {pipeline_mode = #tpu.pipeline_mode<synchronous>, transform_indices = @transform_5, window_bounds = array<i64: 8, 32>}, {pipeline_mode = #tpu.pipeline_mode<synchronous>, transform_indices = @transform_6, window_bounds = array<i64: 32, 32>}, {pipeline_mode = #tpu.pipeline_mode<synchronous>, transform_indices = @transform_7, window_bounds = array<i64: 32, 8>}, {pipeline_mode = #tpu.pipeline_mode<synchronous>, transform_indices = @transform_8, window_bounds = array<i64: 16, 16>}, {pipeline_mode = #tpu.pipeline_mode<synchronous>, transform_indices = @transform_9, window_bounds = array<i64: 16, 32>}, {pipeline_mode = #tpu.pipeline_mode<synchronous>, transform_indices = @transform_10, window_bounds = array<i64: 32, 32>}, {pipeline_mode = #tpu.pipeline_mode<synchronous>, transform_indices = @transform_11, window_bounds = array<i64: 32, 8>}, {pipeline_mode = #tpu.pipeline_mode<synchronous>, transform_indices = @transform_12, window_bounds = array<i64: 10, 32>}, {transform_indices = @transform_13, window_bounds = array<i64: 8, 128>}]} {
    %c0 = arith.constant 0 : index
    %c0_0 = arith.constant 0 : index
    %0 = vector.load %arg13[%c0, %c0_0] : memref<10x32xf32, #tpu.memory_space<vmem>>, vector<10x32xf32>
    %c0_1 = arith.constant 0 : index
    %c0_2 = arith.constant 0 : index
    %1 = vector.load %arg1[%c0_1, %c0_2] : memref<8x32xf32, #tpu.memory_space<vmem>>, vector<8x32xf32>
    %c0_3 = arith.constant 0 : index
    %c0_4 = arith.constant 0 : index
    %2 = vector.load %arg2[%c0_3, %c0_4] : memref<8x8xf32, #tpu.memory_space<vmem>>, vector<8x8xf32>
    %3 = arith.truncf %1 : vector<8x32xf32> to vector<8x32xbf16>
    %c0_5 = arith.constant 0 : index
    %c0_6 = arith.constant 0 : index
    %4 = vector.load %arg3[%c0_5, %c0_6] : memref<32x32xbf16, #tpu.memory_space<vmem>>, vector<32x32xbf16>
    %cst = arith.constant dense<0.000000e+00> : vector<8x32xf32>
    %5 = tpu.matmul %3, %4, %cst {dimension_numbers = #tpu.dot_dimension_numbers<[1], [0], [0], [1], [0, 0, 1, 1], [], []>} : vector<8x32xbf16>, vector<32x32xbf16>, vector<8x32xf32> -> vector<8x32xf32>
    %6 = vector.extract_strided_slice %0 {offsets = [0, 0], sizes = [1, 32], strides = [1, 1]} : vector<10x32xf32> to vector<1x32xf32>
    %7 = vector.broadcast %6 : vector<1x32xf32> to vector<8x32xf32>
    %8 = arith.addf %5, %7 : vector<8x32xf32>
    %cst_7 = arith.constant 0.000000e+00 : f32
    %9 = vector.broadcast %cst_7 : f32 to vector<8x32xf32>
    %10 = arith.maximumf %8, %9 : vector<8x32xf32>
    %11 = arith.truncf %10 : vector<8x32xf32> to vector<8x32xbf16>
    %c0_8 = arith.constant 0 : index
    %c0_9 = arith.constant 0 : index
    %12 = vector.load %arg4[%c0_8, %c0_9] : memref<32x32xbf16, #tpu.memory_space<vmem>>, vector<32x32xbf16>
    %cst_10 = arith.constant dense<0.000000e+00> : vector<8x32xf32>
    %13 = tpu.matmul %11, %12, %cst_10 {dimension_numbers = #tpu.dot_dimension_numbers<[1], [0], [0], [1], [0, 0, 1, 1], [], []>} : vector<8x32xbf16>, vector<32x32xbf16>, vector<8x32xf32> -> vector<8x32xf32>
    %14 = vector.extract_strided_slice %0 {offsets = [1, 0], sizes = [1, 32], strides = [1, 1]} : vector<10x32xf32> to vector<1x32xf32>
    %15 = vector.broadcast %14 : vector<1x32xf32> to vector<8x32xf32>
    %16 = arith.addf %13, %15 : vector<8x32xf32>
    %cst_11 = arith.constant 0.000000e+00 : f32
    %17 = vector.broadcast %cst_11 : f32 to vector<8x32xf32>
    %18 = arith.maximumf %16, %17 : vector<8x32xf32>
    %19 = arith.truncf %18 : vector<8x32xf32> to vector<8x32xbf16>
    %c0_12 = arith.constant 0 : index
    %c0_13 = arith.constant 0 : index
    %20 = vector.load %arg5[%c0_12, %c0_13] : memref<32x16xbf16, #tpu.memory_space<vmem>>, vector<32x16xbf16>
    %cst_14 = arith.constant dense<0.000000e+00> : vector<8x16xf32>
    %21 = tpu.matmul %19, %20, %cst_14 {dimension_numbers = #tpu.dot_dimension_numbers<[1], [0], [0], [1], [0, 0, 1, 1], [], []>} : vector<8x32xbf16>, vector<32x16xbf16>, vector<8x16xf32> -> vector<8x16xf32>
    %22 = vector.extract_strided_slice %0 {offsets = [2, 0], sizes = [1, 16], strides = [1, 1]} : vector<10x32xf32> to vector<1x16xf32>
    %23 = vector.broadcast %22 : vector<1x16xf32> to vector<8x16xf32>
    %24 = arith.addf %21, %23 : vector<8x16xf32>
    %25 = vector.extract_strided_slice %24 {offsets = [0, 0], sizes = [8, 8], strides = [1, 1]} : vector<8x16xf32> to vector<8x8xf32>
    %26 = vector.extract_strided_slice %24 {offsets = [0, 8], sizes = [8, 8], strides = [1, 1]} : vector<8x16xf32> to vector<8x8xf32>
    %27 = tpu.iota {dimensions = array<i32: 1>} : vector<8x8xi32>
    %cst_15 = arith.constant 0.000000e+00 : f32
    %28 = vector.broadcast %cst_15 : f32 to vector<8x8xf32>
    %29 = vector.extract_strided_slice %26 {offsets = [0, 0], sizes = [8, 1], strides = [1, 1]} : vector<8x8xf32> to vector<8x1xf32>
    %30 = vector.broadcast %29 : vector<8x1xf32> to vector<8x8xf32>
    %31 = arith.cmpf ogt, %26, %30 : vector<8x8xf32>
    %32 = arith.extui %31 : vector<8x8xi1> to vector<8x8xi32>
    %33 = arith.sitofp %32 : vector<8x8xi32> to vector<8x8xf32>
    %34 = vector.broadcast %29 : vector<8x1xf32> to vector<8x8xf32>
    %35 = arith.cmpf oeq, %26, %34 : vector<8x8xf32>
    %c0_i32 = arith.constant 0 : i32
    %36 = vector.broadcast %c0_i32 : i32 to vector<8x8xi32>
    %37 = arith.cmpi slt, %27, %36 : vector<8x8xi32>
    %38 = arith.andi %35, %37 : vector<8x8xi1>
    %39 = arith.extui %38 : vector<8x8xi1> to vector<8x8xi32>
    %40 = arith.sitofp %39 : vector<8x8xi32> to vector<8x8xf32>
    %41 = arith.addf %33, %40 : vector<8x8xf32>
    %cst_16 = arith.constant dense<0.000000e+00> : vector<8xf32>
    %42 = vector.multi_reduction <add>, %41, %cst_16 [1] : vector<8x8xf32> to vector<8xf32>
    %43 = vector.shape_cast %42 : vector<8xf32> to vector<8x1xf32>
    %c0_i32_17 = arith.constant 0 : i32
    %44 = vector.broadcast %c0_i32_17 : i32 to vector<8x8xi32>
    %45 = arith.cmpi eq, %27, %44 : vector<8x8xi32>
    %46 = arith.extui %45 : vector<8x8xi1> to vector<8x8xi32>
    %47 = arith.sitofp %46 : vector<8x8xi32> to vector<8x8xf32>
    %48 = vector.broadcast %43 : vector<8x1xf32> to vector<8x8xf32>
    %49 = arith.mulf %48, %47 : vector<8x8xf32>
    %50 = arith.addf %28, %49 : vector<8x8xf32>
    %51 = vector.extract_strided_slice %26 {offsets = [0, 1], sizes = [8, 1], strides = [1, 1]} : vector<8x8xf32> to vector<8x1xf32>
    %52 = vector.broadcast %51 : vector<8x1xf32> to vector<8x8xf32>
    %53 = arith.cmpf ogt, %26, %52 : vector<8x8xf32>
    %54 = arith.extui %53 : vector<8x8xi1> to vector<8x8xi32>
    %55 = arith.sitofp %54 : vector<8x8xi32> to vector<8x8xf32>
    %56 = vector.broadcast %51 : vector<8x1xf32> to vector<8x8xf32>
    %57 = arith.cmpf oeq, %26, %56 : vector<8x8xf32>
    %c1_i32 = arith.constant 1 : i32
    %58 = vector.broadcast %c1_i32 : i32 to vector<8x8xi32>
    %59 = arith.cmpi slt, %27, %58 : vector<8x8xi32>
    %60 = arith.andi %57, %59 : vector<8x8xi1>
    %61 = arith.extui %60 : vector<8x8xi1> to vector<8x8xi32>
    %62 = arith.sitofp %61 : vector<8x8xi32> to vector<8x8xf32>
    %63 = arith.addf %55, %62 : vector<8x8xf32>
    %cst_18 = arith.constant dense<0.000000e+00> : vector<8xf32>
    %64 = vector.multi_reduction <add>, %63, %cst_18 [1] : vector<8x8xf32> to vector<8xf32>
    %65 = vector.shape_cast %64 : vector<8xf32> to vector<8x1xf32>
    %c1_i32_19 = arith.constant 1 : i32
    %66 = vector.broadcast %c1_i32_19 : i32 to vector<8x8xi32>
    %67 = arith.cmpi eq, %27, %66 : vector<8x8xi32>
    %68 = arith.extui %67 : vector<8x8xi1> to vector<8x8xi32>
    %69 = arith.sitofp %68 : vector<8x8xi32> to vector<8x8xf32>
    %70 = vector.broadcast %65 : vector<8x1xf32> to vector<8x8xf32>
    %71 = arith.mulf %70, %69 : vector<8x8xf32>
    %72 = arith.addf %50, %71 : vector<8x8xf32>
    %73 = vector.extract_strided_slice %26 {offsets = [0, 2], sizes = [8, 1], strides = [1, 1]} : vector<8x8xf32> to vector<8x1xf32>
    %74 = vector.broadcast %73 : vector<8x1xf32> to vector<8x8xf32>
    %75 = arith.cmpf ogt, %26, %74 : vector<8x8xf32>
    %76 = arith.extui %75 : vector<8x8xi1> to vector<8x8xi32>
    %77 = arith.sitofp %76 : vector<8x8xi32> to vector<8x8xf32>
    %78 = vector.broadcast %73 : vector<8x1xf32> to vector<8x8xf32>
    %79 = arith.cmpf oeq, %26, %78 : vector<8x8xf32>
    %c2_i32 = arith.constant 2 : i32
    %80 = vector.broadcast %c2_i32 : i32 to vector<8x8xi32>
    %81 = arith.cmpi slt, %27, %80 : vector<8x8xi32>
    %82 = arith.andi %79, %81 : vector<8x8xi1>
    %83 = arith.extui %82 : vector<8x8xi1> to vector<8x8xi32>
    %84 = arith.sitofp %83 : vector<8x8xi32> to vector<8x8xf32>
    %85 = arith.addf %77, %84 : vector<8x8xf32>
    %cst_20 = arith.constant dense<0.000000e+00> : vector<8xf32>
    %86 = vector.multi_reduction <add>, %85, %cst_20 [1] : vector<8x8xf32> to vector<8xf32>
    %87 = vector.shape_cast %86 : vector<8xf32> to vector<8x1xf32>
    %c2_i32_21 = arith.constant 2 : i32
    %88 = vector.broadcast %c2_i32_21 : i32 to vector<8x8xi32>
    %89 = arith.cmpi eq, %27, %88 : vector<8x8xi32>
    %90 = arith.extui %89 : vector<8x8xi1> to vector<8x8xi32>
    %91 = arith.sitofp %90 : vector<8x8xi32> to vector<8x8xf32>
    %92 = vector.broadcast %87 : vector<8x1xf32> to vector<8x8xf32>
    %93 = arith.mulf %92, %91 : vector<8x8xf32>
    %94 = arith.addf %72, %93 : vector<8x8xf32>
    %95 = vector.extract_strided_slice %26 {offsets = [0, 3], sizes = [8, 1], strides = [1, 1]} : vector<8x8xf32> to vector<8x1xf32>
    %96 = vector.broadcast %95 : vector<8x1xf32> to vector<8x8xf32>
    %97 = arith.cmpf ogt, %26, %96 : vector<8x8xf32>
    %98 = arith.extui %97 : vector<8x8xi1> to vector<8x8xi32>
    %99 = arith.sitofp %98 : vector<8x8xi32> to vector<8x8xf32>
    %100 = vector.broadcast %95 : vector<8x1xf32> to vector<8x8xf32>
    %101 = arith.cmpf oeq, %26, %100 : vector<8x8xf32>
    %c3_i32 = arith.constant 3 : i32
    %102 = vector.broadcast %c3_i32 : i32 to vector<8x8xi32>
    %103 = arith.cmpi slt, %27, %102 : vector<8x8xi32>
    %104 = arith.andi %101, %103 : vector<8x8xi1>
    %105 = arith.extui %104 : vector<8x8xi1> to vector<8x8xi32>
    %106 = arith.sitofp %105 : vector<8x8xi32> to vector<8x8xf32>
    %107 = arith.addf %99, %106 : vector<8x8xf32>
    %cst_22 = arith.constant dense<0.000000e+00> : vector<8xf32>
    %108 = vector.multi_reduction <add>, %107, %cst_22 [1] : vector<8x8xf32> to vector<8xf32>
    %109 = vector.shape_cast %108 : vector<8xf32> to vector<8x1xf32>
    %c3_i32_23 = arith.constant 3 : i32
    %110 = vector.broadcast %c3_i32_23 : i32 to vector<8x8xi32>
    %111 = arith.cmpi eq, %27, %110 : vector<8x8xi32>
    %112 = arith.extui %111 : vector<8x8xi1> to vector<8x8xi32>
    %113 = arith.sitofp %112 : vector<8x8xi32> to vector<8x8xf32>
    %114 = vector.broadcast %109 : vector<8x1xf32> to vector<8x8xf32>
    %115 = arith.mulf %114, %113 : vector<8x8xf32>
    %116 = arith.addf %94, %115 : vector<8x8xf32>
    %117 = vector.extract_strided_slice %26 {offsets = [0, 4], sizes = [8, 1], strides = [1, 1]} : vector<8x8xf32> to vector<8x1xf32>
    %118 = vector.broadcast %117 : vector<8x1xf32> to vector<8x8xf32>
    %119 = arith.cmpf ogt, %26, %118 : vector<8x8xf32>
    %120 = arith.extui %119 : vector<8x8xi1> to vector<8x8xi32>
    %121 = arith.sitofp %120 : vector<8x8xi32> to vector<8x8xf32>
    %122 = vector.broadcast %117 : vector<8x1xf32> to vector<8x8xf32>
    %123 = arith.cmpf oeq, %26, %122 : vector<8x8xf32>
    %c4_i32 = arith.constant 4 : i32
    %124 = vector.broadcast %c4_i32 : i32 to vector<8x8xi32>
    %125 = arith.cmpi slt, %27, %124 : vector<8x8xi32>
    %126 = arith.andi %123, %125 : vector<8x8xi1>
    %127 = arith.extui %126 : vector<8x8xi1> to vector<8x8xi32>
    %128 = arith.sitofp %127 : vector<8x8xi32> to vector<8x8xf32>
    %129 = arith.addf %121, %128 : vector<8x8xf32>
    %cst_24 = arith.constant dense<0.000000e+00> : vector<8xf32>
    %130 = vector.multi_reduction <add>, %129, %cst_24 [1] : vector<8x8xf32> to vector<8xf32>
    %131 = vector.shape_cast %130 : vector<8xf32> to vector<8x1xf32>
    %c4_i32_25 = arith.constant 4 : i32
    %132 = vector.broadcast %c4_i32_25 : i32 to vector<8x8xi32>
    %133 = arith.cmpi eq, %27, %132 : vector<8x8xi32>
    %134 = arith.extui %133 : vector<8x8xi1> to vector<8x8xi32>
    %135 = arith.sitofp %134 : vector<8x8xi32> to vector<8x8xf32>
    %136 = vector.broadcast %131 : vector<8x1xf32> to vector<8x8xf32>
    %137 = arith.mulf %136, %135 : vector<8x8xf32>
    %138 = arith.addf %116, %137 : vector<8x8xf32>
    %139 = vector.extract_strided_slice %26 {offsets = [0, 5], sizes = [8, 1], strides = [1, 1]} : vector<8x8xf32> to vector<8x1xf32>
    %140 = vector.broadcast %139 : vector<8x1xf32> to vector<8x8xf32>
    %141 = arith.cmpf ogt, %26, %140 : vector<8x8xf32>
    %142 = arith.extui %141 : vector<8x8xi1> to vector<8x8xi32>
    %143 = arith.sitofp %142 : vector<8x8xi32> to vector<8x8xf32>
    %144 = vector.broadcast %139 : vector<8x1xf32> to vector<8x8xf32>
    %145 = arith.cmpf oeq, %26, %144 : vector<8x8xf32>
    %c5_i32 = arith.constant 5 : i32
    %146 = vector.broadcast %c5_i32 : i32 to vector<8x8xi32>
    %147 = arith.cmpi slt, %27, %146 : vector<8x8xi32>
    %148 = arith.andi %145, %147 : vector<8x8xi1>
    %149 = arith.extui %148 : vector<8x8xi1> to vector<8x8xi32>
    %150 = arith.sitofp %149 : vector<8x8xi32> to vector<8x8xf32>
    %151 = arith.addf %143, %150 : vector<8x8xf32>
    %cst_26 = arith.constant dense<0.000000e+00> : vector<8xf32>
    %152 = vector.multi_reduction <add>, %151, %cst_26 [1] : vector<8x8xf32> to vector<8xf32>
    %153 = vector.shape_cast %152 : vector<8xf32> to vector<8x1xf32>
    %c5_i32_27 = arith.constant 5 : i32
    %154 = vector.broadcast %c5_i32_27 : i32 to vector<8x8xi32>
    %155 = arith.cmpi eq, %27, %154 : vector<8x8xi32>
    %156 = arith.extui %155 : vector<8x8xi1> to vector<8x8xi32>
    %157 = arith.sitofp %156 : vector<8x8xi32> to vector<8x8xf32>
    %158 = vector.broadcast %153 : vector<8x1xf32> to vector<8x8xf32>
    %159 = arith.mulf %158, %157 : vector<8x8xf32>
    %160 = arith.addf %138, %159 : vector<8x8xf32>
    %161 = vector.extract_strided_slice %26 {offsets = [0, 6], sizes = [8, 1], strides = [1, 1]} : vector<8x8xf32> to vector<8x1xf32>
    %162 = vector.broadcast %161 : vector<8x1xf32> to vector<8x8xf32>
    %163 = arith.cmpf ogt, %26, %162 : vector<8x8xf32>
    %164 = arith.extui %163 : vector<8x8xi1> to vector<8x8xi32>
    %165 = arith.sitofp %164 : vector<8x8xi32> to vector<8x8xf32>
    %166 = vector.broadcast %161 : vector<8x1xf32> to vector<8x8xf32>
    %167 = arith.cmpf oeq, %26, %166 : vector<8x8xf32>
    %c6_i32 = arith.constant 6 : i32
    %168 = vector.broadcast %c6_i32 : i32 to vector<8x8xi32>
    %169 = arith.cmpi slt, %27, %168 : vector<8x8xi32>
    %170 = arith.andi %167, %169 : vector<8x8xi1>
    %171 = arith.extui %170 : vector<8x8xi1> to vector<8x8xi32>
    %172 = arith.sitofp %171 : vector<8x8xi32> to vector<8x8xf32>
    %173 = arith.addf %165, %172 : vector<8x8xf32>
    %cst_28 = arith.constant dense<0.000000e+00> : vector<8xf32>
    %174 = vector.multi_reduction <add>, %173, %cst_28 [1] : vector<8x8xf32> to vector<8xf32>
    %175 = vector.shape_cast %174 : vector<8xf32> to vector<8x1xf32>
    %c6_i32_29 = arith.constant 6 : i32
    %176 = vector.broadcast %c6_i32_29 : i32 to vector<8x8xi32>
    %177 = arith.cmpi eq, %27, %176 : vector<8x8xi32>
    %178 = arith.extui %177 : vector<8x8xi1> to vector<8x8xi32>
    %179 = arith.sitofp %178 : vector<8x8xi32> to vector<8x8xf32>
    %180 = vector.broadcast %175 : vector<8x1xf32> to vector<8x8xf32>
    %181 = arith.mulf %180, %179 : vector<8x8xf32>
    %182 = arith.addf %160, %181 : vector<8x8xf32>
    %183 = vector.extract_strided_slice %26 {offsets = [0, 7], sizes = [8, 1], strides = [1, 1]} : vector<8x8xf32> to vector<8x1xf32>
    %184 = vector.broadcast %183 : vector<8x1xf32> to vector<8x8xf32>
    %185 = arith.cmpf ogt, %26, %184 : vector<8x8xf32>
    %186 = arith.extui %185 : vector<8x8xi1> to vector<8x8xi32>
    %187 = arith.sitofp %186 : vector<8x8xi32> to vector<8x8xf32>
    %188 = vector.broadcast %183 : vector<8x1xf32> to vector<8x8xf32>
    %189 = arith.cmpf oeq, %26, %188 : vector<8x8xf32>
    %c7_i32 = arith.constant 7 : i32
    %190 = vector.broadcast %c7_i32 : i32 to vector<8x8xi32>
    %191 = arith.cmpi slt, %27, %190 : vector<8x8xi32>
    %192 = arith.andi %189, %191 : vector<8x8xi1>
    %193 = arith.extui %192 : vector<8x8xi1> to vector<8x8xi32>
    %194 = arith.sitofp %193 : vector<8x8xi32> to vector<8x8xf32>
    %195 = arith.addf %187, %194 : vector<8x8xf32>
    %cst_30 = arith.constant dense<0.000000e+00> : vector<8xf32>
    %196 = vector.multi_reduction <add>, %195, %cst_30 [1] : vector<8x8xf32> to vector<8xf32>
    %197 = vector.shape_cast %196 : vector<8xf32> to vector<8x1xf32>
    %c7_i32_31 = arith.constant 7 : i32
    %198 = vector.broadcast %c7_i32_31 : i32 to vector<8x8xi32>
    %199 = arith.cmpi eq, %27, %198 : vector<8x8xi32>
    %200 = arith.extui %199 : vector<8x8xi1> to vector<8x8xi32>
    %201 = arith.sitofp %200 : vector<8x8xi32> to vector<8x8xf32>
    %202 = vector.broadcast %197 : vector<8x1xf32> to vector<8x8xf32>
    %203 = arith.mulf %202, %201 : vector<8x8xf32>
    %204 = arith.addf %182, %203 : vector<8x8xf32>
    %cst_32 = arith.constant 4.000000e+00 : f32
    %205 = vector.broadcast %cst_32 : f32 to vector<8x8xf32>
    %206 = arith.cmpf olt, %204, %205 : vector<8x8xf32>
    %207 = arith.extui %206 : vector<8x8xi1> to vector<8x8xi32>
    %208 = arith.sitofp %207 : vector<8x8xi32> to vector<8x8xf32>
    %209 = arith.mulf %2, %208 : vector<8x8xf32>
    %210 = vector.extract_strided_slice %0 {offsets = [3, 0], sizes = [1, 32], strides = [1, 1]} : vector<10x32xf32> to vector<1x32xf32>
    %211 = vector.extract_strided_slice %0 {offsets = [4, 0], sizes = [1, 32], strides = [1, 1]} : vector<10x32xf32> to vector<1x32xf32>
    %212 = vector.extract_strided_slice %0 {offsets = [5, 0], sizes = [1, 8], strides = [1, 1]} : vector<10x32xf32> to vector<1x8xf32>
    %213 = arith.truncf %209 : vector<8x8xf32> to vector<8x8xbf16>
    %c0_33 = arith.constant 0 : index
    %c0_34 = arith.constant 0 : index
    %214 = vector.load %arg6[%c0_33, %c0_34] : memref<8x32xbf16, #tpu.memory_space<vmem>>, vector<8x32xbf16>
    %cst_35 = arith.constant dense<0.000000e+00> : vector<8x32xf32>
    %215 = tpu.matmul %213, %214, %cst_35 {dimension_numbers = #tpu.dot_dimension_numbers<[1], [0], [0], [1], [0, 0, 1, 1], [], []>} : vector<8x8xbf16>, vector<8x32xbf16>, vector<8x32xf32> -> vector<8x32xf32>
    %216 = vector.broadcast %210 : vector<1x32xf32> to vector<8x32xf32>
    %217 = arith.addf %215, %216 : vector<8x32xf32>
    %cst_36 = arith.constant 0.000000e+00 : f32
    %218 = vector.broadcast %cst_36 : f32 to vector<8x32xf32>
    %219 = arith.maximumf %217, %218 : vector<8x32xf32>
    %220 = arith.truncf %219 : vector<8x32xf32> to vector<8x32xbf16>
    %c0_37 = arith.constant 0 : index
    %c0_38 = arith.constant 0 : index
    %221 = vector.load %arg7[%c0_37, %c0_38] : memref<32x32xbf16, #tpu.memory_space<vmem>>, vector<32x32xbf16>
    %cst_39 = arith.constant dense<0.000000e+00> : vector<8x32xf32>
    %222 = tpu.matmul %220, %221, %cst_39 {dimension_numbers = #tpu.dot_dimension_numbers<[1], [0], [0], [1], [0, 0, 1, 1], [], []>} : vector<8x32xbf16>, vector<32x32xbf16>, vector<8x32xf32> -> vector<8x32xf32>
    %223 = vector.broadcast %211 : vector<1x32xf32> to vector<8x32xf32>
    %224 = arith.addf %222, %223 : vector<8x32xf32>
    %cst_40 = arith.constant 0.000000e+00 : f32
    %225 = vector.broadcast %cst_40 : f32 to vector<8x32xf32>
    %226 = arith.maximumf %224, %225 : vector<8x32xf32>
    %227 = arith.truncf %226 : vector<8x32xf32> to vector<8x32xbf16>
    %c0_41 = arith.constant 0 : index
    %c0_42 = arith.constant 0 : index
    %228 = vector.load %arg8[%c0_41, %c0_42] : memref<32x8xbf16, #tpu.memory_space<vmem>>, vector<32x8xbf16>
    %cst_43 = arith.constant dense<0.000000e+00> : vector<8x8xf32>
    %229 = tpu.matmul %227, %228, %cst_43 {dimension_numbers = #tpu.dot_dimension_numbers<[1], [0], [0], [1], [0, 0, 1, 1], [], []>} : vector<8x32xbf16>, vector<32x8xbf16>, vector<8x8xf32> -> vector<8x8xf32>
    %230 = vector.broadcast %212 : vector<1x8xf32> to vector<8x8xf32>
    %231 = arith.addf %229, %230 : vector<8x8xf32>
    %232 = tpu.concatenate %25, %231 in 1 : vector<8x8xf32>, vector<8x8xf32> -> vector<8x16xf32>
    %233 = arith.truncf %232 : vector<8x16xf32> to vector<8x16xbf16>
    %c0_44 = arith.constant 0 : index
    %c0_45 = arith.constant 0 : index
    %234 = vector.load %arg9[%c0_44, %c0_45] : memref<16x16xbf16, #tpu.memory_space<vmem>>, vector<16x16xbf16>
    %cst_46 = arith.constant dense<0.000000e+00> : vector<8x16xf32>
    %235 = tpu.matmul %233, %234, %cst_46 {dimension_numbers = #tpu.dot_dimension_numbers<[1], [0], [0], [1], [0, 0, 1, 1], [], []>} : vector<8x16xbf16>, vector<16x16xbf16>, vector<8x16xf32> -> vector<8x16xf32>
    %236 = vector.extract_strided_slice %0 {offsets = [6, 0], sizes = [1, 16], strides = [1, 1]} : vector<10x32xf32> to vector<1x16xf32>
    %237 = vector.broadcast %236 : vector<1x16xf32> to vector<8x16xf32>
    %238 = arith.addf %235, %237 : vector<8x16xf32>
    %239 = arith.negf %238 : vector<8x16xf32>
    %240 = math.exp %239 : vector<8x16xf32>
    %cst_47 = arith.constant 1.000000e+00 : f32
    %241 = vector.broadcast %cst_47 : f32 to vector<8x16xf32>
    %242 = arith.addf %241, %240 : vector<8x16xf32>
    %243 = arith.divf %241, %242 : vector<8x16xf32>
    %244 = arith.mulf %232, %243 : vector<8x16xf32>
    %245 = vector.extract_strided_slice %0 {offsets = [7, 0], sizes = [1, 32], strides = [1, 1]} : vector<10x32xf32> to vector<1x32xf32>
    %246 = vector.extract_strided_slice %0 {offsets = [8, 0], sizes = [1, 32], strides = [1, 1]} : vector<10x32xf32> to vector<1x32xf32>
    %247 = vector.extract_strided_slice %0 {offsets = [9, 0], sizes = [1, 8], strides = [1, 1]} : vector<10x32xf32> to vector<1x8xf32>
    %248 = arith.truncf %244 : vector<8x16xf32> to vector<8x16xbf16>
    %c0_48 = arith.constant 0 : index
    %c0_49 = arith.constant 0 : index
    %249 = vector.load %arg10[%c0_48, %c0_49] : memref<16x32xbf16, #tpu.memory_space<vmem>>, vector<16x32xbf16>
    %cst_50 = arith.constant dense<0.000000e+00> : vector<8x32xf32>
    %250 = tpu.matmul %248, %249, %cst_50 {dimension_numbers = #tpu.dot_dimension_numbers<[1], [0], [0], [1], [0, 0, 1, 1], [], []>} : vector<8x16xbf16>, vector<16x32xbf16>, vector<8x32xf32> -> vector<8x32xf32>
    %251 = vector.broadcast %245 : vector<1x32xf32> to vector<8x32xf32>
    %252 = arith.addf %250, %251 : vector<8x32xf32>
    %cst_51 = arith.constant 0.000000e+00 : f32
    %253 = vector.broadcast %cst_51 : f32 to vector<8x32xf32>
    %254 = arith.maximumf %252, %253 : vector<8x32xf32>
    %255 = arith.truncf %254 : vector<8x32xf32> to vector<8x32xbf16>
    %c0_52 = arith.constant 0 : index
    %c0_53 = arith.constant 0 : index
    %256 = vector.load %arg11[%c0_52, %c0_53] : memref<32x32xbf16, #tpu.memory_space<vmem>>, vector<32x32xbf16>
    %cst_54 = arith.constant dense<0.000000e+00> : vector<8x32xf32>
    %257 = tpu.matmul %255, %256, %cst_54 {dimension_numbers = #tpu.dot_dimension_numbers<[1], [0], [0], [1], [0, 0, 1, 1], [], []>} : vector<8x32xbf16>, vector<32x32xbf16>, vector<8x32xf32> -> vector<8x32xf32>
    %258 = vector.broadcast %246 : vector<1x32xf32> to vector<8x32xf32>
    %259 = arith.addf %257, %258 : vector<8x32xf32>
    %cst_55 = arith.constant 0.000000e+00 : f32
    %260 = vector.broadcast %cst_55 : f32 to vector<8x32xf32>
    %261 = arith.maximumf %259, %260 : vector<8x32xf32>
    %262 = arith.truncf %261 : vector<8x32xf32> to vector<8x32xbf16>
    %c0_56 = arith.constant 0 : index
    %c0_57 = arith.constant 0 : index
    %263 = vector.load %arg12[%c0_56, %c0_57] : memref<32x8xbf16, #tpu.memory_space<vmem>>, vector<32x8xbf16>
    %cst_58 = arith.constant dense<0.000000e+00> : vector<8x8xf32>
    %264 = tpu.matmul %262, %263, %cst_58 {dimension_numbers = #tpu.dot_dimension_numbers<[1], [0], [0], [1], [0, 0, 1, 1], [], []>} : vector<8x32xbf16>, vector<32x8xbf16>, vector<8x8xf32> -> vector<8x8xf32>
    %265 = vector.broadcast %247 : vector<1x8xf32> to vector<8x8xf32>
    %266 = arith.addf %264, %265 : vector<8x8xf32>
    %cst_59 = arith.constant 0.000000e+00 : f32
    %267 = vector.broadcast %cst_59 : f32 to vector<8x104xf32>
    %268 = tpu.concatenate %25, %231, %266, %267 in 1 : vector<8x8xf32>, vector<8x8xf32>, vector<8x8xf32>, vector<8x104xf32> -> vector<8x128xf32>
    %c0_60 = arith.constant 0 : index
    %c0_61 = arith.constant 0 : index
    %269 = vector.load %arg14[%c0_60, %c0_61] : memref<8x128xf32, #tpu.memory_space<vmem>>, vector<8x128xf32>
    tpu.vector_store %arg14[%c0_60, %c0_61], %268 {strides = array<i32>} : memref<8x128xf32, #tpu.memory_space<vmem>>, vector<8x128xf32>,
    return
  }
  func.func @transform_0(%arg0: i32) -> (i32, i32) {
    %c0_i32 = arith.constant 0 : i32
    %c0_i32_0 = arith.constant 0 : i32
    return %arg0, %c0_i32 : i32, i32
  }
  func.func @transform_1(%arg0: i32) -> (i32, i32) {
    %c0_i32 = arith.constant 0 : i32
    %c0_i32_0 = arith.constant 0 : i32
    return %arg0, %c0_i32 : i32, i32
  }
  func.func @transform_2(%arg0: i32) -> (i32, i32) {
    %c0_i32 = arith.constant 0 : i32
    %c0_i32_0 = arith.constant 0 : i32
    %c0_i32_1 = arith.constant 0 : i32
    return %c0_i32, %c0_i32_0 : i32, i32
  }
  func.func @transform_3(%arg0: i32) -> (i32, i32) {
    %c0_i32 = arith.constant 0 : i32
    %c0_i32_0 = arith.constant 0 : i32
    %c0_i32_1 = arith.constant 0 : i32
    return %c0_i32, %c0_i32_0 : i32, i32
  }
  func.func @transform_4(%arg0: i32) -> (i32, i32) {
    %c0_i32 = arith.constant 0 : i32
    %c0_i32_0 = arith.constant 0 : i32
    %c0_i32_1 = arith.constant 0 : i32
    return %c0_i32, %c0_i32_0 : i32, i32
  }
  func.func @transform_5(%arg0: i32) -> (i32, i32) {
    %c0_i32 = arith.constant 0 : i32
    %c0_i32_0 = arith.constant 0 : i32
    %c0_i32_1 = arith.constant 0 : i32
    return %c0_i32, %c0_i32_0 : i32, i32
  }
  func.func @transform_6(%arg0: i32) -> (i32, i32) {
    %c0_i32 = arith.constant 0 : i32
    %c0_i32_0 = arith.constant 0 : i32
    %c0_i32_1 = arith.constant 0 : i32
    return %c0_i32, %c0_i32_0 : i32, i32
  }
  func.func @transform_7(%arg0: i32) -> (i32, i32) {
    %c0_i32 = arith.constant 0 : i32
    %c0_i32_0 = arith.constant 0 : i32
    %c0_i32_1 = arith.constant 0 : i32
    return %c0_i32, %c0_i32_0 : i32, i32
  }
  func.func @transform_8(%arg0: i32) -> (i32, i32) {
    %c0_i32 = arith.constant 0 : i32
    %c0_i32_0 = arith.constant 0 : i32
    %c0_i32_1 = arith.constant 0 : i32
    return %c0_i32, %c0_i32_0 : i32, i32
  }
  func.func @transform_9(%arg0: i32) -> (i32, i32) {
    %c0_i32 = arith.constant 0 : i32
    %c0_i32_0 = arith.constant 0 : i32
    %c0_i32_1 = arith.constant 0 : i32
    return %c0_i32, %c0_i32_0 : i32, i32
  }
  func.func @transform_10(%arg0: i32) -> (i32, i32) {
    %c0_i32 = arith.constant 0 : i32
    %c0_i32_0 = arith.constant 0 : i32
    %c0_i32_1 = arith.constant 0 : i32
    return %c0_i32, %c0_i32_0 : i32, i32
  }
  func.func @transform_11(%arg0: i32) -> (i32, i32) {
    %c0_i32 = arith.constant 0 : i32
    %c0_i32_0 = arith.constant 0 : i32
    %c0_i32_1 = arith.constant 0 : i32
    return %c0_i32, %c0_i32_0 : i32, i32
  }
  func.func @transform_12(%arg0: i32) -> (i32, i32) {
    %c0_i32 = arith.constant 0 : i32
    %c0_i32_0 = arith.constant 0 : i32
    %c0_i32_1 = arith.constant 0 : i32
    return %c0_i32, %c0_i32_0 : i32, i32
  }
  func.func @transform_13(%arg0: i32) -> (i32, i32) {
    %c0_i32 = arith.constant 0 : i32
    %c0_i32_0 = arith.constant 0 : i32
    return %arg0, %c0_i32 : i32, i32
  }
}

</mosaic_0001>

<bundles_post_ra>
// kernel: tpu_custom_call.1
= control target key start
LH: loop header
LB: loop body
LE: loop exit
PB: predicated region body
PF: predicated region fallthrough
CT: control target
= control target key end

     0   :  { %18 = vsyncpa [#allocation3], 0  ;;  %s1360_s0 = inlined_call_operand.hbm [shape: f32[8,32], index: 0, kind: input, shape index: {}]   ;;  %s1361_s1 = inlined_call_operand.hbm [shape: f32[8,8], index: 1, kind: input, shape index: {}]   ;;  %s1362_s2 = inlined_call_operand.vmem [shape: bf16[32,32], index: 2, kind: input, shape index: {}]   ;;  %s1363_s3 = inlined_call_operand.vmem [shape: bf16[32,32], index: 3, kind: input, shape index: {}]   ;;  %s1364_s4 = inlined_call_operand.vmem [shape: bf16[32,16], index: 4, kind: input, shape index: {}]   ;;  %s1365_s5 = inlined_call_operand.hbm [shape: bf16[8,32], index: 5, kind: input, shape index: {}]   ;;  %s1366_s6 = inlined_call_operand.vmem [shape: bf16[32,32], index: 6, kind: input, shape index: {}]   ;;  %s1367_s7 = inlined_call_operand.vmem [shape: bf16[32,8], index: 7, kind: input, shape index: {}]   ;;  %s1368_s8 = inlined_call_operand.hbm [shape: bf16[16,16], index: 8, kind: input, shape index: {}]   ;;  %s1369_s9 = inlined_call_operand.hbm [shape: bf16[16,32], index: 9, kind: input, shape index: {}]   ;;  %s1370_s10 = inlined_call_operand.vmem [shape: bf16[32,32], index: 10, kind: input, shape index: {}]   ;;  %s1371_s11 = inlined_call_operand.vmem [shape: bf16[32,8], index: 11, kind: input, shape index: {}]   ;;  %s1372_s12 = inlined_call_operand.hbm [shape: f32[10,32], index: 12, kind: input, shape index: {}]   ;;  %s1373_s13 = inlined_call_operand.hbm [shape: f32[8,128], index: 13, kind: output, shape index: {}]  }
   0x1   :  { %19 = vsyncpa [#allocation6], 0 }
   0x2   :  { %20 = vsyncpa [#allocation9], 0 }
   0x3   :  { %21 = vsyncpa [#allocation12], 0  ;;  %s39_s27 = sshll.u32 %s1361_s1, 4  ;;  %s40_s27 = int_to_ptr.hbm [resolvable:$true] %s39_s27 }
   0x4   :  { %22 = vsyncpa [#allocation4], 0  ;;  %s1081_s28 = smov [#allocation5]   ;;  %s70_s15 = sshll.u32 %s1368_s8, 4  ;;  %s71_s15 = int_to_ptr.hbm [resolvable:$true] %s70_s15 }
   0x5   :  { %s41_s29 = sshll.u32 %s1081_s28, 4  ;;  %s1082_s16 = smov [#allocation8]   ;;  %s42_s29 = int_to_ptr.vmem [resolvable:$true] %s41_s29 }
   0x6   :  { %44 = dma.hbm_to_vmem [thread:$0]  %s40_s27, 128, %s42_s29, [#allocation6]  }
   0x7   :  { %s72_s17 = sshll.u32 %s1082_s16, 4  ;;  %s1083_s18 = smov 64   ;;  %s73_s17 = int_to_ptr.vmem [resolvable:$true] %s72_s17 }
   0x8   :  { %s1084_s19 = smov 4   ;;  %s28_s1 = sshll.u32 %s1360_s0, 4  ;;  %s29_s1 = int_to_ptr.hbm [resolvable:$true] %s28_s1 }
   0x9   :  { %78 = dma.hbm_to_vmem [thread:$0]  %s71_s15, 128, %s73_s17, [#allocation9], %s1083_s18, %s1083_s18, %s1084_s19  }
   0xa   :  { %s1085_s22 = smov [#allocation2]   ;;  %s56_s8 = sshll.u32 %s1365_s5, 4  ;;  %s57_s8 = int_to_ptr.hbm [resolvable:$true] %s56_s8 }
   0xb   :  { %s30_s23 = sshll.u32 %s1085_s22, 4  ;;  %s1086_s26 = smov [#allocation7]   ;;  %s31_s23 = int_to_ptr.vmem [resolvable:$true] %s30_s23 }
   0xc   :  { %33 = dma.hbm_to_vmem [thread:$0]  %s29_s1, 128, %s31_s23, [#allocation3]  }
   0xd   :  { %s58_s27 = sshll.u32 %s1086_s26, 4  ;;  %s83_s30 = sshll.u32 %s1369_s9, 4  ;;  %s59_s27 = int_to_ptr.vmem [resolvable:$true] %s58_s27  ;;  %s84_s30 = int_to_ptr.hbm [resolvable:$true] %s83_s30 }
   0xe   :  { %61 = dma.hbm_to_vmem [thread:$0]  %s57_s8, 64, %s59_s27, [#allocation6]  }
   0xf   :  { %s100_s15 = sshll.u32 %s1372_s12, 4  ;;  %s1087_s16 = smov [#allocation10]   ;;  %s101_s15 = int_to_ptr.hbm [resolvable:$true] %s100_s15 }
  0x10   :  { %s85_s17 = sshll.u32 %s1087_s16, 4  ;;  %s1088_s5 = smov [#allocation11]   ;;  %s86_s17 = int_to_ptr.vmem [resolvable:$true] %s85_s17 }
  0x11   :  { %91 = dma.hbm_to_vmem [thread:$0]  %s84_s30, 128, %s86_s17, [#allocation9], %s1083_s18, %s1083_s18, %s1084_s19  }
  0x12   :  { %s102_s20 = sshll.u32 %s1088_s5, 4  ;;  %s1089_s21 = smov 128   ;;  %s103_s20 = int_to_ptr.vmem [resolvable:$true] %s102_s20 }
  0x13   :  { %s1090_s1 = smov 8  }
  0x14   :  { %108 = dma.hbm_to_vmem [thread:$0]  %s101_s15, 256, %s103_s20, [#allocation12], %s1089_s21, %s1089_s21, %s1090_s1  }
  0x15   :  { %1071 = dma.done.wait [#allocation3], 128  }
  0x16   :  { %1072 = vsyncadd [#allocation3], 4294967168 }
  0x17   :  { %1073 = dma.done.wait [#allocation6], 192  }
  0x18   :  { %1074 = vsyncadd [#allocation6], 4294967104 }
  0x19   :  { %1075 = dma.done.wait [#allocation9], 256  }
  0x1a   :  { %1076 = vsyncadd [#allocation9], 4294967040 }
  0x1b   :  { %1077 = dma.done.wait [#allocation12], 256  }
  0x1c   :  { %1078 = vsyncadd [#allocation12], 4294967040  ;;  %v853_v0 = vld [vmem:[%s1362_s2 + $0x8] sm:$0xff]  ;;  %v852_v1 = vld [vmem:[%s1362_s2] sm:$0xff]  ;;  %vm156_vm0 = vcmask 261120   ;;  %v243_v15 = vlaneseq  ;;  %v1091_v16 = vmov 0  }
  0x1d   :  { %166 = vmatpush.bf16.msra.mxu0 %v853_v0  ;;  %v136_v2 = vld [vmem:[#allocation2] sm:$0xff]  ;;  %v855_v4 = vld [vmem:[%s1363_s3 + $0x8] sm:$0xff]  ;;  %256 = vrot.lane.b32.xlu0 %v1091_v16, %s1090_s1  ;;  %v1092_v29 = vmov 10   ;;  %v1093_v30 = vmov 9   ;;  %v1094_v31 = vmov 8   ;;  %v1095_v36 = vmov 12  }
  0x1e   :  { %v138_v3 = vpack.c.bf16 %v136_v2, %v136_v2  ;;  %201 = vmatpush.bf16.msra.mxu1 %v855_v4  ;;  %v854_v5 = vld [vmem:[%s1363_s3] sm:$0xff]  ;;  %v857_v13 = vld [vmem:[%s1364_s4 + $0x8] sm:$0xff]  ;;  %v1217_v17 = vand.u32 127, %v243_v15  ;;  %893 = vset.pattern.permute.xlu2 %v1092_v29  ;;  %v1096_v37 = vmov 14   ;;  %v1097_v38 = vmov 11   ;;  %s1101_s3 = smov 120  }
  0x1f   :  { %v1206_v6 = vld [vmem:[#allocation11] sm:$0xff]  ;;  %236 = vmatpush.bf16.msra.mxu2 %v857_v13  ;;  %892 = vset.pattern.permute.xlu1 %v1093_v30  ;;  %v1098_v40 = vmov 13   ;;  %v1099_v41 = vmov 15   ;;  %v1100_v53 = vmov 0.0   ;;  %s1103_s9 = smov [#allocation13]   ;;  %s739_s22 = sshll.u32 %s1373_s13, 4  ;;  %s740_s22 = int_to_ptr.hbm [resolvable:$true] %s739_s22 }
  0x20   :  { %v143_v7 = vperm.slane %v1206_v6, 0  ;;  %v856_v14 = vld [vmem:[%s1364_s4] sm:$0xff]  ;;  %vm284_vm1 = vcmp.lt.s32.totalorder %v1217_v17, 1  ;;  %vm400_vm2 = vcmp.lt.s32.totalorder %v1217_v17, 5  ;;  %vm313_vm3 = vcmp.lt.s32.totalorder %v1217_v17, 2  ;;  %891 = vset.pattern.permute.xlu0 %v1094_v31  ;;  %s737_s12 = sshll.u32 %s1103_s9, 4  ;;  %s738_s12 = int_to_ptr.vmem [resolvable:$true] %s737_s12 }
  0x21   :  { %167 = vmatpush.bf16.msra.mxu0 %v852_v1  ;;  %v285_v18 = vsel %vm284_vm1, 1, %v1091_v16  ;;  %v401_v19 = vsel %vm400_vm2, 1, %v1091_v16  ;;  %v314_v20 = vsel %vm313_vm3, 1, %v1091_v16  ;;  %vm342_vm4 = vcmp.lt.s32.totalorder %v1217_v17, 3 }
  0x22   :  { %202 = vmatpush.bf16.msra.mxu1 %v854_v5  ;;  %286 = vrot.lane.b32.xlu1 %v285_v18, %s1090_s1  ;;  %v343_v21 = vsel %vm342_vm4, 1, %v1091_v16  ;;  %vm371_vm5 = vcmp.lt.s32.totalorder %v1217_v17, 4  ;;  %v179_v23 = vperm.slane %v1206_v6, 1  ;;  %v214_v32 = vperm.slane %v1206_v6, 2 }
  0x23   :  { %237 = vmatpush.bf16.msra.mxu2 %v856_v14  ;;  %315 = vrot.lane.b32.xlu2 %v314_v20, %s1090_s1  ;;  %v372_v22 = vsel %vm371_vm5, 1, %v1091_v16  ;;  %vm458_vm6 = vcmp.lt.s32.totalorder %v1217_v17, 7  ;;  %vm429_vm7 = vcmp.lt.s32.totalorder %v1217_v17, 6 }
  0x24   :  { %760 = vmatmul.msk.bf16.vlgmr.msra.gmra.mxu0 %vm156_vm0, %v138_v3  ;;  %v459_v39 = vsel %vm458_vm6, 1, %v1091_v16  ;;  %v430_v42 = vsel %vm429_vm7, 1, %v1091_v16 }
  0x25   :  { %402 = vrot.lane.b32.xlu0 %v401_v19, %s1090_s1 }
  0x2a   :  { %344 = vrot.lane.b32.xlu1 %v343_v21, %s1090_s1 }
  0x32   :  { %373 = vrot.lane.b32.xlu1 %v372_v22, %s1090_s1 }
  0x7d   :  { %v316_v44 = vpop.permute.xlu2 %315 }
  0x7e   :  { %vm317_vm3 = vcmp.ne.s32.totalorder %v316_v44, 0 }
  0x8f   :  { %v257_v45 = vpop.permute.xlu0 %256 }
  0x90   :  { %vm258_vm11 = vcmp.ne.s32.totalorder %v257_v45, 0  ;;  %v858_v45 = vld [vmem:[%s1366_s6] sm:$0xff] }
  0x94   :  { %v287_v43 = vpop.permute.xlu1 %286 }
  0x95   :  { %vm288_vm8 = vcmp.ne.s32.totalorder %v287_v43, 0 }
  0x97   :  { %v403_v48 = vpop.permute.xlu0 %402 }
  0x9c   :  { %v345_v46 = vpop.permute.xlu1 %344 }
  0xa1   :  { %v169_v8 = vpop.f32.mrf.mxu0 }
  0xa2   :  { %v170_v9 = vadd.f32 %v169_v8, %v143_v7 }
  0xa4   :  { %v173_v10 = vmax.f32 %v170_v9, 0.0  ;;  %v374_v49 = vpop.permute.xlu1 %373 }
  0xa5   :  { %vm375_vm15 = vcmp.ne.s32.totalorder %v374_v49, 0 }
  0xa6   :  { %v174_v11 = vpack.c.bf16 %v173_v10, %v173_v10 }
  0xa8   :  { %769 = vmatmul.msk.bf16.vlgmr.msra.gmra.mxu1 %vm156_vm0, %v174_v11 }
  0xa9   :  { %v171_v12 = vpop.f32.mrf.mxu0 }
 0x125   :  { %v204_v24 = vpop.f32.mrf.mxu1 }
 0x126   :  { %v205_v25 = vadd.f32 %v204_v24, %v179_v23 }
 0x128   :  { %v208_v26 = vmax.f32 %v205_v25, 0.0 }
 0x12a   :  { %v209_v27 = vpack.c.bf16 %v208_v26, %v208_v26 }
 0x12c   :  { %778 = vmatmul.msk.bf16.vlgmr.msra.gmra.mxu2 %vm156_vm0, %v209_v27 }
 0x12d   :  { %v206_v28 = vpop.f32.mrf.mxu1 }
 0x1af   :  { %v239_v33 = vpop.f32.mrf.mxu2 }
 0x1b0   :  { %v1232_v34 = vadd.f32 %v239_v33, %v214_v32 }
 0x1b2   :  { %306 = vperm.xlu2 %893, %v1232_v34   ;;  %277 = vperm.xlu1 %892, %v1232_v34  }
 0x1b3   :  { %247 = vperm.xlu0 %891, %v1232_v34  }
 0x1b7   :  { %v241_v35 = vpop.f32.mrf.mxu2 }
 0x1ba   :  { %895 = vset.pattern.permute.xlu2 %v1095_v36  ;;  %897 = vset.pattern.permute.xlu1 %v1096_v37 }
 0x1bb   :  { %894 = vset.pattern.permute.xlu0 %v1097_v38  ;;  %364 = vperm.xlu2 %895, %v1232_v34  }
 0x1bc   :  { %422 = vperm.xlu1 %897, %v1232_v34   ;;  %335 = vperm.xlu0 %894, %v1232_v34  }
 0x1c3   :  { %896 = vset.pattern.permute.xlu2 %v1098_v40 }
 0x1c4   :  { %898 = vset.pattern.permute.xlu0 %v1099_v41  ;;  %393 = vperm.xlu2 %896, %v1232_v34  }
 0x1c5   :  { %460 = vrot.lane.b32.xlu1 %v459_v39, %s1090_s1  ;;  %451 = vperm.xlu0 %898, %v1232_v34   ;;  %v484_v39 = vld [vmem:[#allocation7] sm:$0xf] }
 0x1cc   :  { %431 = vrot.lane.b32.xlu2 %v430_v42, %s1090_s1  ;;  %v859_v42 = vld [vmem:[%s1366_s6 + $0x8] sm:$0xff] }
 0x20c   :  { %v307_v47 = vpop.permute.xlu2 %306 }
 0x20d   :  { %vm312_vm4 = vcmp.eq.f32.partialorder %v1232_v34, %v307_v47  ;;  %vm309_vm7 = vcmp.gt.f32.partialorder %v1232_v34, %v307_v47 }
 0x20e   :  { %v785_v63 = vsel %vm309_vm7, 1.0, %v1100_v53 }
 0x215   :  { %v365_v50 = vpop.permute.xlu2 %364 }
 0x216   :  { %vm370_vm1 = vcmp.eq.f32.partialorder %v1232_v34, %v365_v50  ;;  %vm367_vm5 = vcmp.gt.f32.partialorder %v1232_v34, %v365_v50 }
 0x217   :  { %vm376_vm6 = vmand %vm370_vm1, %vm375_vm15  ;;  %v791_v61 = vsel %vm367_vm5, 1.0, %v1100_v53 }
 0x218   :  { %v792_v62 = vsel %vm376_vm6, 1.0, %v1100_v53 }
 0x219   :  { %v379_v4 = vadd.f32 %v792_v62, %v791_v61 }
 0x21e   :  { %v394_v55 = vpop.permute.xlu2 %393 }
 0x224   :  { %v278_v51 = vpop.permute.xlu1 %277 }
 0x225   :  { %vm280_vm9 = vcmp.gt.f32.partialorder %v1232_v34, %v278_v51  ;;  %vm283_vm10 = vcmp.eq.f32.partialorder %v1232_v34, %v278_v51  ;;  %v248_v52 = vpop.permute.xlu0 %247 }
 0x226   :  { %v782_v54 = vsel %vm280_vm9, 1.0, %v1100_v53  ;;  %vm289_vm12 = vmand %vm283_vm10, %vm288_vm8  ;;  %vm250_vm13 = vcmp.gt.f32.partialorder %v1232_v34, %v248_v52  ;;  %vm253_vm14 = vcmp.eq.f32.partialorder %v1232_v34, %v248_v52  ;;  %v432_v3 = vpop.permute.xlu2 %431 }
 0x227   :  { %v783_v56 = vsel %vm289_vm12, 1.0, %v1100_v53  ;;  %v779_v57 = vsel %vm250_vm13, 1.0, %v1100_v53  ;;  %vm259_vm2 = vmand %vm253_vm14, %vm258_vm11  ;;  %vm346_vm11 = vcmp.ne.s32.totalorder %v345_v46, 0  ;;  %vm399_vm12 = vcmp.eq.f32.partialorder %v1232_v34, %v394_v55 }
 0x228   :  { %v292_v58 = vadd.f32 %v783_v56, %v782_v54  ;;  %v780_v59 = vsel %vm259_vm2, 1.0, %v1100_v53  ;;  %vm318_vm8 = vmand %vm312_vm4, %vm317_vm3  ;;  %vm404_vm14 = vcmp.ne.s32.totalorder %v403_v48, 0  ;;  %vm433_vm15 = vcmp.ne.s32.totalorder %v432_v3, 0 }
 0x229   :  { %v262_v60 = vadd.f32 %v780_v59, %v779_v57  ;;  %v786_v0 = vsel %vm318_vm8, 1.0, %v1100_v53  ;;  %vm396_vm2 = vcmp.gt.f32.partialorder %v1232_v34, %v394_v55  ;;  %vm405_vm3 = vmand %vm399_vm12, %vm404_vm14  ;;  %vm300_vm12 = vcmp.eq.s32.totalorder %v1217_v17, 1 }
 0x22a   :  { %294 = vrot.lane.b32.xlu1 %v292_v58, %s1101_s3  ;;  %v321_v7 = vadd.f32 %v786_v0, %v785_v63  ;;  %v794_v10 = vsel %vm396_vm2, 1.0, %v1100_v53  ;;  %v795_v11 = vsel %vm405_vm3, 1.0, %v1100_v53  ;;  %v784_v43 = vsel %vm300_vm12, 1.0, %v1100_v53 }
 0x22b   :  { %264 = vrot.lane.b32.xlu2 %v262_v60, %s1101_s3  ;;  %v408_v16 = vadd.f32 %v795_v11, %v794_v10  ;;  %vm329_vm14 = vcmp.eq.s32.totalorder %v1217_v17, 2  ;;  %vm416_vm2 = vcmp.eq.s32.totalorder %v1217_v17, 5  ;;  %vm445_vm3 = vcmp.eq.s32.totalorder %v1217_v17, 6 }
 0x22c   :  { %v787_v50 = vsel %vm329_vm14, 1.0, %v1100_v53  ;;  %v796_v59 = vsel %vm416_vm2, 1.0, %v1100_v53 }
 0x22e   :  { %v423_v1 = vpop.permute.xlu1 %422  ;;  %v336_v2 = vpop.permute.xlu0 %335 }
 0x22f   :  { %vm338_vm9 = vcmp.gt.f32.partialorder %v1232_v34, %v336_v2  ;;  %vm341_vm10 = vcmp.eq.f32.partialorder %v1232_v34, %v336_v2  ;;  %vm428_vm1 = vcmp.eq.f32.partialorder %v1232_v34, %v423_v1  ;;  %vm425_vm4 = vcmp.gt.f32.partialorder %v1232_v34, %v423_v1 }
 0x230   :  { %v788_v5 = vsel %vm338_vm9, 1.0, %v1100_v53  ;;  %vm347_vm13 = vmand %vm341_vm10, %vm346_vm11  ;;  %v797_v12 = vsel %vm425_vm4, 1.0, %v1100_v53  ;;  %vm267_vm10 = vcmask 64512   ;;  %vm489_vm11 = vcmask 1043456  }
 0x231   :  { %v789_v8 = vsel %vm347_vm13, 1.0, %v1100_v53  ;;  %vm434_vm5 = vmand %vm428_vm1, %vm433_vm15  ;;  %v491_v40 = vsel %vm489_vm11, %v484_v39, 0  ;;  %vm271_vm13 = vcmp.eq.s32.totalorder %v1217_v17, 0  ;;  %vm358_vm15 = vcmp.eq.s32.totalorder %v1217_v17, 3 }
 0x232   :  { %381 = vrot.lane.b32.xlu1 %v379_v4, %s1101_s3  ;;  %v350_v9 = vadd.f32 %v789_v8, %v788_v5  ;;  %v798_v15 = vsel %vm434_vm5, 1.0, %v1100_v53  ;;  %500 = vmatpush.bf16.msra.mxu3 %v491_v40  ;;  %v781_v46 = vsel %vm271_vm13, 1.0, %v1100_v53  ;;  %v790_v52 = vsel %vm358_vm15, 1.0, %v1100_v53 }
 0x233   :  { %323 = vrot.lane.b32.xlu2 %v321_v7, %s1101_s3  ;;  %v437_v20 = vadd.f32 %v798_v15, %v797_v12  ;;  %vm387_vm1 = vcmp.eq.s32.totalorder %v1217_v17, 4  ;;  %vm474_vm4 = vcmp.eq.s32.totalorder %v1217_v17, 7  ;;  %v799_v2 = vsel %vm445_vm3, 1.0, %v1100_v53  ;;  %v137_v12 = vld [vmem:[#allocation5] sm:$0xff] }
 0x234   :  { %352 = vrot.lane.b32.xlu0 %v350_v9, %s1101_s3  ;;  %v793_v57 = vsel %vm387_vm1, 1.0, %v1100_v53  ;;  %v802_v5 = vsel %vm474_vm4, 1.0, %v1100_v53  ;;  %v861_v17 = vld [vmem:[%s1367_s7 + $0x8] sm:$0xff]  ;;  %v584_v39 = vperm.slane %v1206_v6, 6  ;;  %vm729_vm11 = vcmask 195584  }
 0x235   :  { %569 = vmatpush.bf16.msrb.mxu0 %v861_v17 }
 0x236   :  { %534 = vmatpush.bf16.msrb.mxu3 %v859_v42 }
 0x237   :  { %v461_v13 = vpop.permute.xlu1 %460  ;;  %v452_v14 = vpop.permute.xlu0 %451 }
 0x238   :  { %vm462_vm6 = vcmp.ne.s32.totalorder %v461_v13, 0  ;;  %vm454_vm7 = vcmp.gt.f32.partialorder %v1232_v34, %v452_v14  ;;  %vm457_vm8 = vcmp.eq.f32.partialorder %v1232_v34, %v452_v14 }
 0x239   :  { %v800_v18 = vsel %vm454_vm7, 1.0, %v1100_v53  ;;  %vm463_vm9 = vmand %vm457_vm8, %vm462_vm6  ;;  %vm591_vm6 = vcmask 130048  }
 0x23a   :  { %v801_v19 = vsel %vm463_vm9, 1.0, %v1100_v53  ;;  %535 = vmatpush.bf16.msrb.mxu3 %v858_v45 }
 0x23b   :  { %v466_v21 = vadd.f32 %v801_v19, %v800_v18  ;;  %410 = vrot.lane.b32.xlu2 %v408_v16, %s1101_s3  ;;  %v860_v16 = vld [vmem:[%s1367_s7] sm:$0xff]  ;;  %v485_v18 = vperm.slane %v1206_v6, 3 }
 0x23c   :  { %439 = vrot.lane.b32.xlu0 %v437_v20, %s1101_s3  ;;  %570 = vmatpush.bf16.msrb.mxu0 %v860_v16 }
 0x23d   :  { %468 = vrot.lane.b32.xlu1 %v466_v21, %s1101_s3 }
 0x285   :  { %v265_v22 = vpop.permute.xlu2 %264 }
 0x286   :  { %v268_v23 = vsel %vm267_vm10, %v265_v22, 0.0 }
 0x287   :  { %269 = vadd.xlane.f32.xlu2 %v268_v23  ;;  %v512_v23 = vperm.slane %v1206_v6, 4 }
 0x28d   :  { %v324_v24 = vpop.permute.xlu2 %323 }
 0x28e   :  { %v326_v25 = vsel %vm267_vm10, %v324_v24, 0.0 }
 0x28f   :  { %327 = vadd.xlane.f32.xlu1 %v326_v25 }
 0x295   :  { %v411_v28 = vpop.permute.xlu2 %410 }
 0x296   :  { %v413_v29 = vsel %vm267_vm10, %v411_v28, 0.0 }
 0x29c   :  { %v295_v26 = vpop.permute.xlu1 %294 }
 0x29d   :  { %v297_v27 = vsel %vm267_vm10, %v295_v26, 0.0 }
 0x29e   :  { %298 = vadd.xlane.f32.xlu0 %v297_v27 }
 0x2a4   :  { %v382_v32 = vpop.permute.xlu1 %381 }
 0x2a5   :  { %v384_v35 = vsel %vm267_vm10, %v382_v32, 0.0 }
 0x2a6   :  { %414 = vadd.xlane.f32.xlu0 %v413_v29  ;;  %v353_v30 = vpop.permute.xlu0 %352  ;;  %v862_v29 = vld [vmem:[#allocation8] sm:$0xff] }
 0x2a7   :  { %v355_v31 = vsel %vm267_vm10, %v353_v30, 0.0  ;;  %602 = vmatpush.bf16.msrb.mxu1 %v862_v29  ;;  %v547_v30 = vperm.slane %v1206_v6, 5 }
 0x2a8   :  { %356 = vadd.xlane.f32.xlu2 %v355_v31 }
 0x2ae   :  { %v440_v33 = vpop.permute.xlu0 %439 }
 0x2af   :  { %v442_v36 = vsel %vm267_vm10, %v440_v33, 0.0  ;;  %v469_v37 = vpop.permute.xlu1 %468 }
 0x2b0   :  { %385 = vadd.xlane.f32.xlu2 %v384_v35  ;;  %443 = vadd.xlane.f32.xlu1 %v442_v36  ;;  %v471_v38 = vsel %vm267_vm10, %v469_v37, 0.0 }
 0x2b8   :  { %472 = vadd.xlane.f32.xlu2 %v471_v38  ;;  %v863_v38 = vld [vmem:[#allocation10] sm:$0xff] }
 0x2b9   :  { %648 = vmatpush.bf16.msrb.mxu2 %v863_v38 }
 0x2fa   :  { %v270_v41 = vpop.xlane.xlu2 %269 }
 0x2fb   :  { %v274_v49 = vmul.f32 %v781_v46, %v270_v41 }
 0x302   :  { %v328_v51 = vpop.xlane.xlu1 %327 }
 0x303   :  { %v332_v55 = vmul.f32 %v787_v50, %v328_v51 }
 0x311   :  { %v299_v44 = vpop.xlane.xlu0 %298 }
 0x312   :  { %v303_v47 = vmul.f32 %v784_v43, %v299_v44  ;;  %v865_v43 = vld [vmem:[%s1370_s10 + $0x8] sm:$0xff] }
 0x314   :  { %v304_v54 = vadd.f32 %v303_v47, %v274_v49 }
 0x316   :  { %v333_v58 = vadd.f32 %v332_v55, %v304_v54 }
 0x319   :  { %v415_v60 = vpop.xlane.xlu0 %414 }
 0x31a   :  { %v419_v0 = vmul.f32 %v796_v59, %v415_v60  ;;  %v867_v60 = vld [vmem:[%s1371_s11 + $0x8] sm:$0xff] }
 0x31b   :  { %v357_v48 = vpop.xlane.xlu2 %356  ;;  %717 = vmatpush.bf16.msra.mxu0 %v867_v60 }
 0x31c   :  { %v361_v56 = vmul.f32 %v790_v52, %v357_v48 }
 0x31e   :  { %v362_v62 = vadd.f32 %v361_v56, %v333_v58 }
 0x323   :  { %v386_v61 = vpop.xlane.xlu2 %385  ;;  %v444_v3 = vpop.xlane.xlu1 %443 }
 0x324   :  { %v390_v63 = vmul.f32 %v793_v57, %v386_v61  ;;  %v448_v7 = vmul.f32 %v799_v2, %v444_v3  ;;  %v866_v61 = vld [vmem:[%s1371_s11] sm:$0xff]  ;;  %s1102_s11 = smov 16  }
 0x325   :  { %718 = vmatpush.bf16.msra.mxu0 %v866_v61 }
 0x326   :  { %v391_v1 = vadd.f32 %v390_v63, %v362_v62  ;;  %v631_v62 = vperm.slane %v1206_v6, 7 }
 0x328   :  { %v420_v4 = vadd.f32 %v419_v0, %v391_v1 }
 0x32a   :  { %v449_v9 = vadd.f32 %v448_v7, %v420_v4  ;;  %v135_v4 = vld [vmem:[#allocation11 + $0x8] sm:$0x3] }
 0x32b   :  { %v473_v8 = vpop.xlane.xlu2 %472 }
 0x32c   :  { %v477_v10 = vmul.f32 %v802_v5, %v473_v8  ;;  %v660_v5 = vperm.slane %v135_v4, 0 }
 0x32e   :  { %v478_v11 = vadd.f32 %v477_v10, %v449_v9 }
 0x330   :  { %vm479_vm5 = vcmp.lt.f32.partialorder %v478_v11, 4.0 }
 0x331   :  { %v803_v13 = vsel %vm479_vm5, 1.0, %v1100_v53 }
 0x332   :  { %v482_v14 = vmul.f32 %v803_v13, %v137_v12  ;;  %v695_v12 = vperm.slane %v135_v4, 1 }
 0x334   :  { %v483_v15 = vpack.c.bf16 %v482_v14, %v482_v14 }
 0x336   :  { %804 = vmatmul.msk.bf16.vlgmr.msra.gmra.mxu3 %vm267_vm10, %v483_v15 }
 0x337   :  { %682 = vmatpush.bf16.msra.mxu3 %v865_v43 }
 0x3b9   :  { %v502_v19 = vpop.f32.mrf.mxu3 }
 0x3ba   :  { %v503_v20 = vadd.f32 %v502_v19, %v485_v18 }
 0x3bc   :  { %v506_v21 = vmax.f32 %v503_v20, 0.0 }
 0x3be   :  { %v507_v53 = vpack.c.bf16 %v506_v21, %v506_v21 }
 0x3c0   :  { %813 = vmatmul.msk.bf16.vlgmr.msrb.gmra.mxu3 %vm156_vm0, %v507_v53 }
 0x3c1   :  { %v504_v22 = vpop.f32.mrf.mxu3 }
 0x443   :  { %v537_v24 = vpop.f32.mrf.mxu3 }
 0x444   :  { %v538_v25 = vadd.f32 %v537_v24, %v512_v23 }
 0x446   :  { %v541_v26 = vmax.f32 %v538_v25, 0.0 }
 0x448   :  { %v542_v27 = vpack.c.bf16 %v541_v26, %v541_v26 }
 0x44a   :  { %822 = vmatmul.msk.bf16.vlgmr.msrb.gmra.mxu0 %vm156_vm0, %v542_v27 }
 0x44b   :  { %v539_v28 = vpop.f32.mrf.mxu3 }
 0x4c7   :  { %v572_v31 = vpop.f32.mrf.mxu0 }
 0x4c8   :  { %v573_v32 = vadd.f32 %v572_v31, %v547_v30 }
 0x4ca   :  { %577 = vrot.lane.b32.xlu0 %v573_v32, %s1090_s1 }
 0x4cf   :  { %v574_v33 = vpop.f32.mrf.mxu0 }
 0x53c   :  { %v578_v35 = vpop.permute.xlu0 %577 }
 0x53d   :  { %v1332_v36 = vsel %vm267_vm10, %v1232_v34, %v578_v35  ;;  %v864_v34 = vld [vmem:[%s1370_s10] sm:$0xff] }
 0x53e   :  { %v581_v37 = vpack.c.bf16 %v1332_v36, %v1332_v36  ;;  %683 = vmatpush.bf16.msra.mxu3 %v864_v34 }
 0x540   :  { %827 = vmatmul.msk.bf16.vlgmr.msrb.gmra.mxu1 %vm591_vm6, %v581_v37 }
 0x5bd   :  { %v604_v40 = vpop.f32.mrf.mxu1 }
 0x5be   :  { %v605_v41 = vadd.f32 %v604_v40, %v584_v39 }
 0x5c0   :  { %v828_v42 = vmul.f32 -1.442695, %v605_v41 }
 0x5c2   :  { %899 = vpow2.f32 %v828_v42 }
 0x5c5   :  { %v606_v44 = vpop.f32.mrf.mxu1 }
 0x5c8   :  { %v900_v45 = vpop.eup %899 }
 0x5c9   :  { %v611_v46 = vadd.f32 1.0, %v900_v45 }
 0x5cb   :  { %901 = vrcp.f32 %v611_v46  ;;  %v623_v50 = vand.u32 2147483648, %v611_v46  ;;  %v621_v52 = vand.u32 2147483647, %v611_v46  ;;  %vm617_vm8 = vweird.f32 %v611_v46 }
 0x5cd   :  { %v624_v55 = vor.u32 1.1754944e-38, %v623_v50  ;;  %vm622_vm10 = vcmp.eq.f32.partialorder %v621_v52, 8.507059e+37 }
 0x5d1   :  { %v902_v47 = vpop.eup %901 }
 0x5d2   :  { %v613_v48 = vmul.f32 %v902_v47, %v611_v46  ;;  %vm618_vm7 = vweird.f32 %v902_v47 }
 0x5d3   :  { %vm619_vm9 = vmor %vm617_vm8, %vm618_vm7 }
 0x5d4   :  { %v614_v49 = vsub.f32 1.0, %v613_v48 }
 0x5d6   :  { %v615_v51 = vmul.f32 %v902_v47, %v614_v49 }
 0x5d8   :  { %v616_v54 = vadd.f32 %v902_v47, %v615_v51 }
 0x5da   :  { %v620_v56 = vsel %vm619_vm9, %v902_v47, %v616_v54 }
 0x5db   :  { %v625_v57 = vsel %vm622_vm10, %v624_v55, %v620_v56 }
 0x5dc   :  { %v627_v58 = vmul.f32 %v625_v57, %v1332_v36 }
 0x5de   :  { %v628_v59 = vpack.c.bf16 %v627_v58, %v627_v58 }
 0x5e0   :  { %833 = vmatmul.msk.bf16.vlgmr.msrb.gmra.mxu2 %vm591_vm6, %v628_v59 }
 0x663   :  { %v650_v63 = vpop.f32.mrf.mxu2 }
 0x664   :  { %v651_v0 = vadd.f32 %v650_v63, %v631_v62 }
 0x666   :  { %v654_v1 = vmax.f32 %v651_v0, 0.0 }
 0x668   :  { %v655_v2 = vpack.c.bf16 %v654_v1, %v654_v1 }
 0x66a   :  { %842 = vmatmul.msk.bf16.vlgmr.msra.gmra.mxu3 %vm156_vm0, %v655_v2 }
 0x66b   :  { %v652_v3 = vpop.f32.mrf.mxu2 }
 0x6ed   :  { %v685_v7 = vpop.f32.mrf.mxu3 }
 0x6ee   :  { %v686_v8 = vadd.f32 %v685_v7, %v660_v5 }
 0x6f0   :  { %v689_v9 = vmax.f32 %v686_v8, 0.0 }
 0x6f2   :  { %v690_v10 = vpack.c.bf16 %v689_v9, %v689_v9 }
 0x6f4   :  { %851 = vmatmul.msk.bf16.vlgmr.msra.gmra.mxu0 %vm156_vm0, %v690_v10 }
 0x6f5   :  { %v687_v11 = vpop.f32.mrf.mxu3 }
 0x771   :  { %v720_v13 = vpop.f32.mrf.mxu0 }
 0x772   :  { %v721_v14 = vadd.f32 %v720_v13, %v695_v12 }
 0x774   :  { %725 = vrot.lane.b32.xlu1 %v721_v14, %s1102_s11 }
 0x779   :  { %v722_v6 = vpop.f32.mrf.mxu0 }
 0x7e6   :  { %v726_v15 = vpop.permute.xlu1 %725 }
 0x7e7   :  { %v728_v17 = vsel %vm591_vm6, %v1332_v36, %v726_v15 }
 0x7e8   :  { %v730_v16 = vsel %vm729_vm11, %v728_v17, 0.0 }
 0x7e9   :  { %731 = vst [vmem:[#allocation13] sm:$0xff] %v730_v16 }
 0x7ea   :  { %742 = dma.vmem_to_hbm [thread:$0]  %s738_s12, 128, %s740_s22, [#allocation4]  }
 0x7eb   :  { %1079 = dma.done.wait [#allocation4], 128  }
 0x7ec   :  { %1080 = vsyncadd [#allocation4], 4294967168 }
 0x7ed   :  { %747 = vsyncpa [#allocation3], 1 }
 0x7ee   :  { %748 = vsyncpa [#allocation6], 1 }
 0x7ef   :  { %749 = vsyncpa [#allocation9], 1 }
 0x7f0   :  { %750 = vsyncpa [#allocation12], 1 }
 0x7f1   :  { %751 = vsyncpa [#allocation4], 1 }

</bundles_post_ra>
